<compile_context>
chip_gen: v5e
topology: v5e:2x2
jax: 0.10.0
libtpu: 0.0.40
codegen_flags: <defaults>
</compile_context>

<pallas_src>
import functools
import math

import jax
import jax.numpy as jnp
from jax.experimental import pallas as pl
from jax.experimental.pallas import tpu as pltpu

_NEG_INF = -1e30
_VMEM_LIMIT = 32 * 1024 * 1024  # conservative; safe on v5e/v6e/v7x


def _pick_tile(full, preferred, granule):
    """Largest t <= preferred with t % granule == 0 and full % t == 0, else `full`."""
    t = (min(preferred, full) // granule) * granule
    while t >= granule:
        if full % t == 0:
            return t
        t -= granule
    return full


# ----------------------------- linear projection -----------------------------

def _linear_kernel(x_ref, w_ref, o_ref, acc_ref):
    # x_ref: (tm, tk); w_ref: (tn, tk) [PyTorch (N, K) layout]; o_ref: (tm, tn)
    @pl.when(pl.program_id(2) == 0)
    def _init():
        acc_ref[...] = jnp.zeros_like(acc_ref)

    acc_ref[...] += jax.lax.dot_general(
        x_ref[...], w_ref[...],
        dimension_numbers=(((1,), (1,)), ((), ())),   # contract K of x with K of w
        preferred_element_type=jnp.float32)

    @pl.when(pl.program_id(2) == pl.num_programs(2) - 1)
    def _fin():
        o_ref[...] = acc_ref[...].astype(o_ref.dtype)


def linear(x2d, w, *, tm_pref=256, tn_pref=256, tk_pref=512):
    """x2d: (M, K); w: (N, K) (nn.Linear layout). Returns x2d @ w.T -> (M, N)."""
    M, K = x2d.shape
    N, K2 = w.shape
    assert K == K2
    tm = _pick_tile(M, tm_pref, 8)
    tn = _pick_tile(N, tn_pref, 128)
    tk = _pick_tile(K, tk_pref, 128)
    grid = (M // tm, N // tn, K // tk)
    itemsize = x2d.dtype.itemsize
    return pl.pallas_call(
        _linear_kernel,
        out_shape=jax.ShapeDtypeStruct((M, N), x2d.dtype),
        grid=grid,
        in_specs=[
            pl.BlockSpec((tm, tk), lambda i, j, k: (i, k)),
            pl.BlockSpec((tn, tk), lambda i, j, k: (j, k)),
        ],
        out_specs=pl.BlockSpec((tm, tn), lambda i, j, k: (i, j)),
        scratch_shapes=[pltpu.VMEM((tm, tn), jnp.float32)],
        compiler_params=pltpu.CompilerParams(
            dimension_semantics=("parallel", "parallel", "arbitrary"),
            vmem_limit_bytes=_VMEM_LIMIT),
        cost_estimate=pl.CostEstimate(
            flops=2 * M * N * K,
            transcendentals=0,
            bytes_accessed=(M * K + N * K + M * N) * itemsize),
    )(x2d, w)


# ------------------------- flash attention (GQA fold) -------------------------

def _flash_attn_kernel(q_ref, k_ref, v_ref, o_ref, m_scr, l_scr, acc_scr,
                       *, scale, start_pos, seqlen):
    # q_ref: (R, D) with R = n_rep * seqlen (GQA group folded into rows)
    # k_ref, v_ref: (tk, D) tile of the KV cache for this group
    # o_ref: (R, D); scratch: m (R,1), l (R,1), acc (R,D) all f32
    li = pl.program_id(2)

    @pl.when(li == 0)
    def _init():
        m_scr[...] = jnp.full_like(m_scr, _NEG_INF)
        l_scr[...] = jnp.zeros_like(l_scr)
        acc_scr[...] = jnp.zeros_like(acc_scr)

    q = q_ref[...]
    k = k_ref[...]
    v = v_ref[...]

    # scores for every folded row vs this KV tile, f32 accumulation on the MXU
    s = jax.lax.dot_general(
        q, k, dimension_numbers=(((1,), (1,)), ((), ())),
        preferred_element_type=jnp.float32) * scale

    R, tk = s.shape
    # causal mask generated in-kernel (no (S, L) mask array in HBM/VMEM)
    row = jax.lax.broadcasted_iota(jnp.int32, (R, tk), 0)
    qpos = row % seqlen                                   # folded row -> query position
    col = jax.lax.broadcasted_iota(jnp.int32, (R, tk), 1) + li * tk
    s = jnp.where(col <= qpos + start_pos, s, _NEG_INF)

    # online softmax update (f32)
    m_prev = m_scr[...]
    m_new = jnp.maximum(m_prev, jnp.max(s, axis=-1, keepdims=True))
    alpha = jnp.exp(m_prev - m_new)
    p = jnp.exp(s - m_new)
    l_scr[...] = alpha * l_scr[...] + jnp.sum(p, axis=-1, keepdims=True)
    acc_scr[...] = alpha * acc_scr[...] + jax.lax.dot_general(
        p.astype(v.dtype), v, dimension_numbers=(((1,), (0,)), ((), ())),
        preferred_element_type=jnp.float32)
    m_scr[...] = m_new

    @pl.when(li == pl.num_programs(2) - 1)
    def _fin():
        l_safe = jnp.maximum(l_scr[...], jnp.float32(1e-30))   # fully-masked-row guard
        o_ref[...] = (acc_scr[...] * pl.reciprocal(l_safe, approx=False)
                      ).astype(o_ref.dtype)


def mha(q_folded, cache_k, cache_v, *, start_pos, seqlen, kv_len, kv_tile):
    """q_folded: (B, H_kv, n_rep*S, D); cache_k/v: (B_max, H_kv, L_max, D).

    Returns (B, H_kv, n_rep*S, D).  GQA is handled by folding the n_rep query heads
    of each KV group into the row axis; the KV cache is read in place, tile by tile,
    and columns >= kv_len (or acausal) are masked in-kernel.
    """
    B, H_kv, R, D = q_folded.shape
    L_max = cache_k.shape[2]
    assert L_max % kv_tile == 0
    n_kv_tiles = pl.cdiv(kv_len, kv_tile)
    scale = 1.0 / math.sqrt(D)
    itemsize = q_folded.dtype.itemsize
    kernel = functools.partial(
        _flash_attn_kernel, scale=scale, start_pos=start_pos, seqlen=seqlen)
    return pl.pallas_call(
        kernel,
        out_shape=jax.ShapeDtypeStruct((B, H_kv, R, D), q_folded.dtype),
        grid=(B, H_kv, n_kv_tiles),
        in_specs=[
            pl.BlockSpec((None, None, R, D), lambda b, h, l: (b, h, 0, 0)),
            pl.BlockSpec((None, None, kv_tile, D), lambda b, h, l: (b, h, l, 0)),
            pl.BlockSpec((None, None, kv_tile, D), lambda b, h, l: (b, h, l, 0)),
        ],
        out_specs=pl.BlockSpec((None, None, R, D), lambda b, h, l: (b, h, 0, 0)),
        scratch_shapes=[
            pltpu.VMEM((R, 1), jnp.float32),   # running max m
            pltpu.VMEM((R, 1), jnp.float32),   # running denom l
            pltpu.VMEM((R, D), jnp.float32),   # output accumulator
        ],
        compiler_params=pltpu.CompilerParams(
            dimension_semantics=("parallel", "parallel", "arbitrary"),
            vmem_limit_bytes=_VMEM_LIMIT),
        cost_estimate=pl.CostEstimate(
            flops=4 * B * H_kv * R * kv_len * D,
            transcendentals=B * H_kv * R * kv_len,
            bytes_accessed=(B * H_kv * R * D * 2 + 2 * B * H_kv * kv_len * D) * itemsize),
    )(q_folded, cache_k, cache_v)


# ------------------------------- JAX glue ------------------------------------

def apply_rotary(x, cos, sin):
    """x: (B, S, H, D); cos/sin: (S, D//2). Interleaved-pair rotation (complex mul)."""
    B, S, H, D = x.shape
    xr = x.astype(jnp.float32).reshape(B, S, H, D // 2, 2)
    x0, x1 = xr[..., 0], xr[..., 1]
    c = cos[None, :, None, :]
    s = sin[None, :, None, :]
    o0 = x0 * c - x1 * s
    o1 = x0 * s + x1 * c
    out = jnp.stack([o0, o1], axis=-1).reshape(B, S, H, D)
    return out.astype(x.dtype)


def attention_forward(params, x, start_pos, cos, sin, n_heads, n_kv_heads,
                      kv_tile_pref=512):
    """Returns (output, new_cache_k, new_cache_v). Caches: (B_max, H_kv, L_max, D)."""
    bsz, seqlen, dim = x.shape
    head_dim = dim // n_heads
    n_rep = n_heads // n_kv_heads

    # QKV projections (tiled Pallas matmuls)
    x2d = x.reshape(bsz * seqlen, dim)
    xq = linear(x2d, params["wq"]).reshape(bsz, seqlen, n_heads, head_dim)
    xk = linear(x2d, params["wk"]).reshape(bsz, seqlen, n_kv_heads, head_dim)
    xv = linear(x2d, params["wv"]).reshape(bsz, seqlen, n_kv_heads, head_dim)

    # RoPE (cheap elementwise glue on the small new-token tensors)
    xq = apply_rotary(xq, cos, sin)
    xk = apply_rotary(xk, cos, sin)

    # KV cache update in the (B_max, H_kv, L_max, D) layout the kernel reads.
    xk_t = jnp.transpose(xk, (0, 2, 1, 3)).astype(params["cache_k"].dtype)
    xv_t = jnp.transpose(xv, (0, 2, 1, 3)).astype(params["cache_v"].dtype)
    cache_k = jax.lax.dynamic_update_slice(params["cache_k"], xk_t, (0, 0, start_pos, 0))
    cache_v = jax.lax.dynamic_update_slice(params["cache_v"], xv_t, (0, 0, start_pos, 0))

    kv_len = start_pos + seqlen
    max_seq_len = cache_k.shape[2]
    kv_tile = _pick_tile(max_seq_len, kv_tile_pref, 8)

    # Fold each GQA group's n_rep query heads into one (n_rep*S, D) row block.
    q_folded = (xq.reshape(bsz, seqlen, n_kv_heads, n_rep, head_dim)
                  .transpose(0, 2, 3, 1, 4)
                  .reshape(bsz, n_kv_heads, n_rep * seqlen, head_dim))

    out = mha(q_folded, cache_k, cache_v,
              start_pos=start_pos, seqlen=seqlen, kv_len=kv_len, kv_tile=kv_tile)

    # Un-fold: (B, H_kv, n_rep*S, D) -> (B*S, H*D), lane-dense slab for the wo matmul.
    out = (out.reshape(bsz, n_kv_heads, n_rep, seqlen, head_dim)
              .transpose(0, 3, 1, 2, 4)
              .reshape(bsz * seqlen, n_heads * head_dim))
    y = linear(out, params["wo"]).reshape(bsz, seqlen, dim)
    return y, cache_k, cache_v


# ---------------------------- pure-JAX reference -----------------------------

def reference_forward(params, x, start_pos, cos, sin, n_heads, n_kv_heads):
    bsz, seqlen, dim = x.shape
    head_dim = dim // n_heads
    n_rep = n_heads // n_kv_heads

    xq = (x @ params["wq"].T).reshape(bsz, seqlen, n_heads, head_dim)
    xk = (x @ params["wk"].T).reshape(bsz, seqlen, n_kv_heads, head_dim)
    xv = (x @ params["wv"].T).reshape(bsz, seqlen, n_kv_heads, head_dim)
    xq = apply_rotary(xq, cos, sin)
    xk = apply_rotary(xk, cos, sin)

    cache_k = jax.lax.dynamic_update_slice(
        params["cache_k"], jnp.transpose(xk, (0, 2, 1, 3)), (0, 0, start_pos, 0))
    cache_v = jax.lax.dynamic_update_slice(
        params["cache_v"], jnp.transpose(xv, (0, 2, 1, 3)), (0, 0, start_pos, 0))

    kv_len = start_pos + seqlen
    keys = jnp.repeat(cache_k[:bsz, :, :kv_len], n_rep, axis=1)     # (B, H, L, D)
    values = jnp.repeat(cache_v[:bsz, :, :kv_len], n_rep, axis=1)

    q = jnp.transpose(xq, (0, 2, 1, 3))                             # (B, H, S, D)
    scores = jnp.einsum("bhsd,bhld->bhsl", q, keys) / math.sqrt(head_dim)
    row = jnp.arange(seqlen)[:, None] + start_pos
    col = jnp.arange(kv_len)[None, :]
    mask = jnp.where(col > row, -jnp.inf, 0.0).astype(jnp.float32)
    scores = scores + mask[None, None]
    probs = jax.nn.softmax(scores.astype(jnp.float32), axis=-1).astype(q.dtype)
    out = jnp.einsum("bhsl,bhld->bhsd", probs, values)
    out = jnp.transpose(out, (0, 2, 1, 3)).reshape(bsz, seqlen, -1)
    return out @ params["wo"].T, cache_k, cache_v


# --------------------------------- main ---------------------------------------

if __name__ == "__main__":
    dim = 32
    n_heads = 4
    n_kv_heads = 2
    head_dim = dim // n_heads           # 8
    max_batch_size = 2
    max_seq_len = 16
    bsz, seqlen = 2, 8
    start_pos = 0

    key = jax.random.PRNGKey(0)
    k_wq, k_wk, k_wv, k_wo, k_x = jax.random.split(key, 5)
    params = {
        "wq": 0.05 * jax.random.normal(k_wq, (n_heads * head_dim, dim), jnp.float32),
        "wk": 0.05 * jax.random.normal(k_wk, (n_kv_heads * head_dim, dim), jnp.float32),
        "wv": 0.05 * jax.random.normal(k_wv, (n_kv_heads * head_dim, dim), jnp.float32),
        "wo": 0.05 * jax.random.normal(k_wo, (dim, n_heads * head_dim), jnp.float32),
        # KV cache stored (B_max, H_kv, L_max, D) -- TPU-friendly layout of the
        # PyTorch (B_max, L_max, H_kv, D) buffers.
        "cache_k": jnp.zeros((max_batch_size, n_kv_heads, max_seq_len, head_dim), jnp.float32),
        "cache_v": jnp.zeros((max_batch_size, n_kv_heads, max_seq_len, head_dim), jnp.float32),
    }
    x = jax.random.normal(k_x, (bsz, seqlen, dim), jnp.float32)

    # freqs_cis represented as cos/sin.
    freqs = 1.0 / (10000.0 ** (jnp.arange(0, head_dim, 2, dtype=jnp.float32) / head_dim))
    t = jnp.arange(start_pos, start_pos + seqlen, dtype=jnp.float32)
    angles = jnp.outer(t, freqs)                    # (seq, head_dim // 2)
    cos, sin = jnp.cos(angles), jnp.sin(angles)

    # kv_tile_pref=8 -> two KV tiles at these toy shapes, exercising the online softmax.
    out, ck, cv = attention_forward(params, x, start_pos, cos, sin,
                                    n_heads, n_kv_heads, kv_tile_pref=8)
    out = jax.block_until_ready(out)

    ref, rck, rcv = reference_forward(params, x, start_pos, cos, sin, n_heads, n_kv_heads)
    assert out.shape == (bsz, seqlen, dim)
    assert jnp.allclose(out, ref, atol=1e-4, rtol=1e-4), float(jnp.max(jnp.abs(out - ref)))
    assert jnp.allclose(ck, rck, atol=1e-5, rtol=1e-5)
    assert jnp.allclose(cv, rcv, atol=1e-5, rtol=1e-5)
    print("KERNEL_OK")
</pallas_src>

<mosaic_0001>
module attributes {stable_mosaic.version = 11 : i64} {
  func.func @_linear_kernel(%arg0: i32, %arg1: i32, %arg2: i32, %arg3: memref<16x32xf32, #tpu.memory_space<vmem>>, %arg4: memref<32x32xf32, #tpu.memory_space<vmem>>, %arg5: memref<16x32xf32, #tpu.memory_space<vmem>>, %arg6: memref<16x32xf32, #tpu.memory_space<vmem>>) attributes {dimension_semantics = [#tpu.dimension_semantics<parallel>, #tpu.dimension_semantics<parallel>, #tpu.dimension_semantics<arbitrary>], iteration_bounds = array<i64: 1, 1, 1>, scalar_prefetch = 0 : i64, scratch_operands = 1 : i64, tpu.core_type = #tpu.core_type<tc>, window_params = [{transform_indices = @transform_0, window_bounds = array<i64: 16, 32>}, {transform_indices = @transform_1, window_bounds = array<i64: 32, 32>}, {transform_indices = @transform_2, window_bounds = array<i64: 16, 32>}]} {
    %c0_i32 = arith.constant 0 : i32
    %0 = arith.cmpi eq, %arg2, %c0_i32 : i32
    %1 = arith.extui %0 : i1 to i32
    %c0_i32_0 = arith.constant 0 : i32
    %2 = arith.cmpi ne, %1, %c0_i32_0 : i32
    scf.if %2 {
      %cst_10 = arith.constant 0.000000e+00 : f32
      %12 = vector.broadcast %cst_10 : f32 to vector<16x32xf32>
      %c0_11 = arith.constant 0 : index
      %c0_12 = arith.constant 0 : index
      %13 = vector.load %arg6[%c0_11, %c0_12] : memref<16x32xf32, #tpu.memory_space<vmem>>, vector<16x32xf32>
      tpu.vector_store %arg6[%c0_11, %c0_12], %12 {strides = array<i32>} : memref<16x32xf32, #tpu.memory_space<vmem>>, vector<16x32xf32>,
    } else {
    }
    %c0 = arith.constant 0 : index
    %c0_1 = arith.constant 0 : index
    %3 = vector.load %arg6[%c0, %c0_1] : memref<16x32xf32, #tpu.memory_space<vmem>>, vector<16x32xf32>
    %c0_2 = arith.constant 0 : index
    %c0_3 = arith.constant 0 : index
    %4 = vector.load %arg3[%c0_2, %c0_3] : memref<16x32xf32, #tpu.memory_space<vmem>>, vector<16x32xf32>
    %c0_4 = arith.constant 0 : index
    %c0_5 = arith.constant 0 : index
    %5 = vector.load %arg4[%c0_4, %c0_5] : memref<32x32xf32, #tpu.memory_space<vmem>>, vector<32x32xf32>
    %cst = arith.constant dense<0.000000e+00> : vector<16x32xf32>
    %6 = tpu.matmul %4, %5, %cst {dimension_numbers = #tpu.dot_dimension_numbers<[1], [1], [0], [0], [0, 0, 1, 0], [], []>} : vector<16x32xf32>, vector<32x32xf32>, vector<16x32xf32> -> vector<16x32xf32>
    %7 = arith.addf %3, %6 : vector<16x32xf32>
    %c0_6 = arith.constant 0 : index
    %c0_7 = arith.constant 0 : index
    %8 = vector.load %arg6[%c0_6, %c0_7] : memref<16x32xf32, #tpu.memory_space<vmem>>, vector<16x32xf32>
    tpu.vector_store %arg6[%c0_6, %c0_7], %7 {strides = array<i32>} : memref<16x32xf32, #tpu.memory_space<vmem>>, vector<16x32xf32>,
    %c0_i32_8 = arith.constant 0 : i32
    %9 = arith.cmpi eq, %arg2, %c0_i32_8 : i32
    %10 = arith.extui %9 : i1 to i32
    %c0_i32_9 = arith.constant 0 : i32
    %11 = arith.cmpi ne, %10, %c0_i32_9 : i32
    scf.if %11 {
      %c0_10 = arith.constant 0 : index
      %c0_11 = arith.constant 0 : index
      %12 = vector.load %arg6[%c0_10, %c0_11] : memref<16x32xf32, #tpu.memory_space<vmem>>, vector<16x32xf32>
      %c0_12 = arith.constant 0 : index
      %c0_13 = arith.constant 0 : index
      %13 = vector.load %arg5[%c0_12, %c0_13] : memref<16x32xf32, #tpu.memory_space<vmem>>, vector<16x32xf32>
      tpu.vector_store %arg5[%c0_12, %c0_13], %12 {strides = array<i32>} : memref<16x32xf32, #tpu.memory_space<vmem>>, vector<16x32xf32>,
    } else {
    }
    return
  }
  func.func @transform_0(%arg0: i32, %arg1: i32, %arg2: i32) -> (i32, i32) {
    %c0_i32 = arith.constant 0 : i32
    return %arg0, %arg2 : i32, i32
  }
  func.func @transform_1(%arg0: i32, %arg1: i32, %arg2: i32) -> (i32, i32) {
    %c0_i32 = arith.constant 0 : i32
    return %arg1, %arg2 : i32, i32
  }
  func.func @transform_2(%arg0: i32, %arg1: i32, %arg2: i32) -> (i32, i32) {
    %c0_i32 = arith.constant 0 : i32
    return %arg0, %arg1 : i32, i32
  }
}

</mosaic_0001>

<bundles_post_ra>
// kernel: tpu_custom_call.1
= control target key start
LH: loop header
LB: loop body
LE: loop exit
PB: predicated region body
PF: predicated region fallthrough
CT: control target
= control target key end

     0   :  { %7 = vsyncpa [#allocation4], 0  ;;  %s281_s0 = inlined_call_operand.hbm [shape: f32[16,32], index: 0, kind: input, shape index: {}]   ;;  %s282_s1 = inlined_call_operand.hbm [shape: f32[32,32], index: 1, kind: input, shape index: {}]   ;;  %s283_s2 = inlined_call_operand.hbm [shape: f32[16,32], index: 2, kind: output, shape index: {}]  }
   0x1   :  { %8 = vsyncpa [#allocation7], 0 }
   0x2   :  { %9 = vsyncpa [#allocation5], 0  ;;  %s14_s11 = sshll.u32 %s281_s0, 4  ;;  %s226_s12 = smov [#allocation3]   ;;  %s15_s11 = int_to_ptr.hbm [resolvable:$true] %s14_s11 }
   0x3   :  { %s16_s13 = sshll.u32 %s226_s12, 4  ;;  %s27_s16 = sshll.u32 %s282_s1, 4  ;;  %s17_s13 = int_to_ptr.vmem [resolvable:$true] %s16_s13  ;;  %s28_s16 = int_to_ptr.hbm [resolvable:$true] %s27_s16 }
   0x4   :  { %s227_s17 = smov 128   ;;  %s228_s18 = smov 8  }
   0x5   :  { %22 = dma.hbm_to_vmem [thread:$0]  %s15_s11, 256, %s17_s13, [#allocation4], %s227_s17, %s227_s17, %s228_s18  }
   0x6   :  { %s229_s19 = smov [#allocation6]  }
   0x7   :  { %s29_s20 = sshll.u32 %s229_s19, 4  ;;  %s30_s20 = int_to_ptr.vmem [resolvable:$true] %s29_s20 }
   0x8   :  { %35 = dma.hbm_to_vmem [thread:$0]  %s28_s16, 512, %s30_s20, [#allocation7], %s227_s17, %s227_s17, %s228_s18  }
   0x9   :  { %220 = dma.done.wait [#allocation4], 256  }
   0xa   :  { %221 = vsyncadd [#allocation4], 4294967040 }
   0xb   :  { %222 = dma.done.wait [#allocation7], 512  }
   0xc   :  { %223 = vsyncadd [#allocation7], 4294966784  ;;  %vm48_vm0 = vcmask 261120   ;;  %v230_v0 = vmov 0.0   ;;  %v58_v1 = vld [vmem:[#allocation6 + $0x18] sm:$0xff]  ;;  %v57_v2 = vld [vmem:[#allocation6 + $0x10] sm:$0xff] }
   0xd   :  { %49 = vst.msk [vmem:[#allocation2] sm:$0xff] %vm48_vm0, %v230_v0  ;;  %132 = vmatpush.xpose.msk.msra.mxu0 %vm48_vm0, %v58_v1  ;;  %138 = vmatpush.xpose.msk.msra.mxu1 %vm48_vm0, %v58_v1  ;;  %v56_v3 = vld [vmem:[#allocation6 + $0x8] sm:$0xff]  ;;  %v55_v4 = vld [vmem:[#allocation6] sm:$0xff]  ;;  %v53_v5 = vld [vmem:[#allocation3] sm:$0xff]  ;;  %s231_s0 = smov [#allocation8]   ;;  %s118_s23 = sshll.u32 %s283_s2, 4  ;;  %s119_s23 = int_to_ptr.hbm [resolvable:$true] %s118_s23 }
   0xe   :  { %50 = vst.msk [vmem:[#allocation2 + $0x8] sm:$0xff] %vm48_vm0, %v230_v0  ;;  %v54_v6 = vld [vmem:[#allocation3 + $0x8] sm:$0xff]  ;;  %s116_s1 = sshll.u32 %s231_s0, 4  ;;  %s117_s1 = int_to_ptr.vmem [resolvable:$true] %s116_s1 }
  0x11   :  { %133 = vmatpush.xpose.msk.msra.mxu0 %vm48_vm0, %v57_v2  ;;  %139 = vmatpush.xpose.msk.msra.mxu1 %vm48_vm0, %v57_v2 }
  0x14   :  { %v51_v7 = vld [vmem:[#allocation2] sm:$0xff] }
  0x15   :  { %134 = vmatpush.xpose.msk.msra.mxu0 %vm48_vm0, %v56_v3  ;;  %140 = vmatpush.xpose.msk.msra.mxu1 %vm48_vm0, %v56_v3  ;;  %v52_v8 = vld [vmem:[#allocation2 + $0x8] sm:$0xff] }
  0x19   :  { %135 = vmatpush.xpose.msk.msra.mxu0 %vm48_vm0, %v55_v4  ;;  %141 = vmatpush.xpose.msk.msra.mxu1 %vm48_vm0, %v55_v4 }
  0x1c   :  { %136 = vmatmul.msk.f32.vlgmr.msra.gmra.mxu0 %vm48_vm0, %v53_v5  ;;  %137 = vmatmul.msk.f32.vlgmr.msra.gmra.mxu1 %vm48_vm0, %v54_v6 }
  0x99   :  { %v95_v9 = vpop.f32.mrf.mxu0  ;;  %v98_v10 = vpop.f32.mrf.mxu1 }
  0x9a   :  { %v101_v11 = vadd.f32 %v95_v9, %v51_v7  ;;  %v102_v12 = vadd.f32 %v98_v10, %v52_v8 }
  0x9c   :  { %103 = vst.msk [vmem:[#allocation2] sm:$0xff] %vm48_vm0, %v101_v11 }
  0x9d   :  { %104 = vst.msk [vmem:[#allocation2 + $0x8] sm:$0xff] %vm48_vm0, %v102_v12 }
  0xa3   :  { %v108_v13 = vld [vmem:[#allocation2] sm:$0xff] }
  0xa4   :  { %v109_v14 = vld [vmem:[#allocation2 + $0x8] sm:$0xff]  ;;  %110 = vst.msk [vmem:[#allocation8] sm:$0xff] %vm48_vm0, %v108_v13 }
  0xa5   :  { %111 = vst.msk [vmem:[#allocation8 + $0x8] sm:$0xff] %vm48_vm0, %v109_v14 }
  0xa6   :  { %124 = dma.vmem_to_hbm [thread:$0]  %s117_s1, 256, %s119_s23, [#allocation5], %s227_s17, %s227_s17, %s228_s18  }
  0xa7   :  { %224 = dma.done.wait [#allocation5], 256  }
  0xa8   :  { %225 = vsyncadd [#allocation5], 4294967040 }
  0xa9   :  { %129 = vsyncpa [#allocation4], 1 }
  0xaa   :  { %130 = vsyncpa [#allocation7], 1 }
  0xab   :  { %131 = vsyncpa [#allocation5], 1 }

</bundles_post_ra>
